<compile_context>
chip_gen: v5e
topology: v5e:2x2
jax: 0.10.0
libtpu: 0.0.40
codegen_flags: <defaults>
</compile_context>

<pallas_src>
import functools

import jax
import jax.numpy as jnp
from jax.experimental import pallas as pl
from jax.experimental.pallas import tpu as pltpu


def _vision_embed_kernel(w_ref, addend_ref, x_ref, o_ref, *, batch_block):
    # w_ref:      (D, Kp)     bf16 flattened conv weight (resident across the grid)
    # addend_ref: (D, N)      f32 fused epilogue addend = pos_w + conv_b (resident)
    # x_ref:      (bb, Kp, N) bf16 patchified pixels for the current image block
    # o_ref:      (bb, D, N)  module-layout output, written once, lane-dense over N (== D)
    w = w_ref[...]
    add = addend_ref[...]
    for b in range(batch_block):  # static, small -> fully unrolled, MXU back-to-back
        acc = jnp.dot(w, x_ref[b], preferred_element_type=jnp.float32)   # (D, N) f32
        o_ref[b] = (acc + add).astype(o_ref.dtype)


def _pad_k(K):
    """Zero-pad the contraction dim: to 128 when cheap (v5e MXU cadence), else to 8."""
    if K % 128 == 0:
        return K
    k128 = ((K + 127) // 128) * 128
    if (k128 - K) / K <= 0.15:
        return k128
    return ((K + 7) // 8) * 8


def _auto_batch_block(B, Kp, N, D,
                      vmem_budget_bytes=40 << 20, min_step_bytes=4 << 20):
    """Images per grid step.

    Grow the per-step streamed bytes (amortize ~0.35us/step overhead) while
      * keeping the double-buffered working set under the VMEM budget (v7x: 64 MiB phys),
      * keeping >= 4 grid steps when possible so both v7x TensorCores get >= 2 steps
        (per-core double buffering of the input/output DMAs).
    """
    step_bytes = lambda bb: bb * (Kp * N * 2 + D * N * 4)
    working_set = lambda bb: 2 * step_bytes(bb) + 2 * (D * Kp * 2 + D * N * 4)
    min_steps = 4 if B >= 4 else (2 if B >= 2 else 1)
    best = 1
    for bb in range(1, B + 1):
        if B % bb:
            continue
        if B // bb < min_steps:
            break
        if working_set(bb) > vmem_budget_bytes:
            break
        best = bb
        if step_bytes(bb) >= min_step_bytes:
            break
    return best


def vision_embeddings(pixel_values, conv_w, conv_b, pos_w, patch_size, batch_block=None):
    B, C, H, W = pixel_values.shape
    P = patch_size
    D = conv_w.shape[0]
    h, w = H // P, W // P
    N = h * w
    K = C * P * P
    # PyTorch's `patch_embeddings += self.position_encoder(self.position_ids)` broadcasts
    # (B, D, N) with (1, N, D); it is only well-defined when N == D.
    assert N == D, "forward() broadcast requires num_patches == hidden_dim"

    Kp = _pad_k(K)
    bb = batch_block if batch_block is not None else _auto_batch_block(B, Kp, N, D)
    assert B % bb == 0
    G = B // bb  # grid steps (parallel)

    # --- glue, kept inside the same jit as the kernel: patchify NCHW -> (B, K, N) with
    # x[b, (c,p,q), (i,j)] = pix[b, c, i*P+p, j*P+q] so the kernel's (D,K)@(K,N) matmul
    # lands straight in the module's (B, D, N) layout (no trailing output transpose).
    x = pixel_values.reshape(B, C, h, P, w, P)
    x = jnp.transpose(x, (0, 1, 3, 5, 2, 4))            # (B, C, P, P, h, w)
    x = x.reshape(B, K, N)

    w_dk = conv_w.reshape(D, K)                          # (D, K), K ordered (c, p, q)
    if Kp != K:                                          # zero-pad contraction dim
        x = jnp.pad(x, ((0, 0), (0, Kp - K), (0, 0)))
        w_dk = jnp.pad(w_dk, ((0, 0), (0, Kp - K)))
    x = x.astype(jnp.bfloat16)
    w_dk = w_dk.astype(jnp.bfloat16)

    # Fused epilogue addend in the output's (D, N) layout (module's N == D broadcast):
    #   out[b, d, n] = conv[b, d, n] + conv_b[d] + pos_w[d, n]
    addend = (pos_w + conv_b[:, None]).astype(jnp.float32)   # (D, N); no tiling over bb

    # Double-buffered streams + resident operands; raise the scoped-VMEM limit explicitly
    # (v5e default is 16 MiB) and cap at 48 MiB to stay inside v7x's 64 MiB physical VMEM.
    vmem_ws = 2 * bb * (Kp * N * 2 + D * N * 4) + 2 * (D * Kp * 2 + D * N * 4)
    vmem_limit = int(min(48 << 20, max(32 << 20, int(vmem_ws * 1.25))))

    kernel = functools.partial(_vision_embed_kernel, batch_block=bb)
    out = pl.pallas_call(
        kernel,
        out_shape=jax.ShapeDtypeStruct((B, D, N), pixel_values.dtype),
        grid_spec=pltpu.PrefetchScalarGridSpec(
            num_scalar_prefetch=0,
            grid=(G,),
            in_specs=[
                # Constant index_maps -> never re-DMA'd. (On v7x they could additionally be
                # single-buffered via pipeline_mode=pl.Buffered(1) to reclaim ~D*(2Kp+4N) B.)
                pl.BlockSpec((D, Kp), lambda g: (0, 0)),         # weight, resident
                pl.BlockSpec((D, N), lambda g: (0, 0)),          # addend, resident
                pl.BlockSpec((bb, Kp, N), lambda g: (g, 0, 0)),  # pixels, streamed
            ],
            out_specs=pl.BlockSpec((bb, D, N), lambda g: (g, 0, 0)),
        ),
        compiler_params=pltpu.CompilerParams(
            dimension_semantics=("parallel",),
            vmem_limit_bytes=vmem_limit),
    )(w_dk, addend, x)
    return out


def _reference(pixel_values, conv_w, conv_b, pos_w, patch_size):
    B, C, H, W = pixel_values.shape
    P = patch_size
    D = conv_w.shape[0]
    N = (H // P) * (W // P)
    conv = jax.lax.conv_general_dilated(
        pixel_values, conv_w, window_strides=(P, P), padding="VALID",
        dimension_numbers=("NCHW", "OIHW", "NCHW"))
    conv = conv + conv_b[None, :, None, None]
    flat = conv.reshape(B, D, N)                          # (B, D, N)
    pos = pos_w[None]                                     # (1, N, D)
    return flat + pos                                     # same broadcast as torch (N == D)


if __name__ == "__main__":
    # Small config: img_size=32, patch_size=4 -> num_patches = 64 = hidden_dim.
    # (D = N = 64 < 128 means masked stores on this demo size; realistic ViT dims are >=128.)
    B, C, IMG, P, D = 2, 3, 32, 4, 64

    key = jax.random.PRNGKey(0)
    k_pix, k_w, k_b, k_pos = jax.random.split(key, 4)
    pixel_values = jax.random.normal(k_pix, (B, C, IMG, IMG), dtype=jnp.float32)
    conv_w = jax.random.normal(k_w, (D, C, P, P), dtype=jnp.float32) * 0.02
    conv_b = jax.random.normal(k_b, (D,), dtype=jnp.float32) * 0.02
    pos_w = jax.random.normal(k_pos, ((IMG // P) ** 2, D), dtype=jnp.float32) * 0.02

    fn = jax.jit(functools.partial(vision_embeddings, patch_size=P))
    out = jax.block_until_ready(fn(pixel_values, conv_w, conv_b, pos_w))

    ref = _reference(pixel_values, conv_w, conv_b, pos_w, P)
    assert out.shape == ref.shape == (B, D, (IMG // P) ** 2)
    # bf16 matmul operands with f32 accumulation: loosen tolerance accordingly.
    assert jnp.allclose(out, ref, atol=1e-2, rtol=1e-2), float(jnp.max(jnp.abs(out - ref)))
    print("KERNEL_OK")
</pallas_src>

<mosaic_0001>
module attributes {stable_mosaic.version = 11 : i64} {
  func.func @_vision_embed_kernel(%arg0: i32, %arg1: memref<64x48xbf16, #tpu.memory_space<vmem>>, %arg2: memref<64x64xf32, #tpu.memory_space<vmem>>, %arg3: memref<1x48x64xbf16, #tpu.memory_space<vmem>>, %arg4: memref<1x64x64xf32, #tpu.memory_space<vmem>>) attributes {dimension_semantics = [#tpu.dimension_semantics<parallel>], iteration_bounds = array<i64: 2>, scalar_prefetch = 0 : i64, scratch_operands = 0 : i64, tpu.core_type = #tpu.core_type<tc>, window_params = [{pipeline_mode = #tpu.pipeline_mode<synchronous>, transform_indices = @transform_0, window_bounds = array<i64: 64, 48>}, {pipeline_mode = #tpu.pipeline_mode<synchronous>, transform_indices = @transform_1, window_bounds = array<i64: 64, 64>}, {transform_indices = @transform_2, window_bounds = array<i64: 1, 48, 64>}, {transform_indices = @transform_3, window_bounds = array<i64: 1, 64, 64>}]} {
    %c0 = arith.constant 0 : index
    %c0_0 = arith.constant 0 : index
    %0 = vector.load %arg1[%c0, %c0_0] : memref<64x48xbf16, #tpu.memory_space<vmem>>, vector<64x48xbf16>
    %c0_1 = arith.constant 0 : index
    %c0_2 = arith.constant 0 : index
    %1 = vector.load %arg2[%c0_1, %c0_2] : memref<64x64xf32, #tpu.memory_space<vmem>>, vector<64x64xf32>
    %c0_3 = arith.constant 0 : index
    %c0_4 = arith.constant 0 : index
    %c0_5 = arith.constant 0 : index
    %2 = vector.load %arg3[%c0_3, %c0_4, %c0_5] : memref<1x48x64xbf16, #tpu.memory_space<vmem>>, vector<1x48x64xbf16>
    %3 = vector.shape_cast %2 : vector<1x48x64xbf16> to vector<48x64xbf16>
    %cst = arith.constant dense<0.000000e+00> : vector<64x64xf32>
    %4 = tpu.matmul %0, %3, %cst {dimension_numbers = #tpu.dot_dimension_numbers<[1], [0], [0], [1], [0, 0, 1, 1], [], []>} : vector<64x48xbf16>, vector<48x64xbf16>, vector<64x64xf32> -> vector<64x64xf32>
    %5 = arith.addf %4, %1 : vector<64x64xf32>
    %c0_6 = arith.constant 0 : index
    %c0_7 = arith.constant 0 : index
    %c0_8 = arith.constant 0 : index
    %6 = vector.load %arg4[%c0_6, %c0_7, %c0_8] : memref<1x64x64xf32, #tpu.memory_space<vmem>>, vector<1x64x64xf32>
    %7 = vector.shape_cast %6 : vector<1x64x64xf32> to vector<64x64xf32>
    %8 = vector.shape_cast %5 : vector<64x64xf32> to vector<1x64x64xf32>
    tpu.vector_store %arg4[%c0_6, %c0_7, %c0_8], %8 {strides = array<i32>} : memref<1x64x64xf32, #tpu.memory_space<vmem>>, vector<1x64x64xf32>,
    return
  }
  func.func @transform_0(%arg0: i32) -> (i32, i32) {
    %c0_i32 = arith.constant 0 : i32
    %c0_i32_0 = arith.constant 0 : i32
    %c0_i32_1 = arith.constant 0 : i32
    return %c0_i32, %c0_i32_0 : i32, i32
  }
  func.func @transform_1(%arg0: i32) -> (i32, i32) {
    %c0_i32 = arith.constant 0 : i32
    %c0_i32_0 = arith.constant 0 : i32
    %c0_i32_1 = arith.constant 0 : i32
    return %c0_i32, %c0_i32_0 : i32, i32
  }
  func.func @transform_2(%arg0: i32) -> (i32, i32, i32) {
    %c0_i32 = arith.constant 0 : i32
    %c0_i32_0 = arith.constant 0 : i32
    %c0_i32_1 = arith.constant 0 : i32
    return %arg0, %c0_i32, %c0_i32_0 : i32, i32, i32
  }
  func.func @transform_3(%arg0: i32) -> (i32, i32, i32) {
    %c0_i32 = arith.constant 0 : i32
    %c0_i32_0 = arith.constant 0 : i32
    %c0_i32_1 = arith.constant 0 : i32
    return %arg0, %c0_i32, %c0_i32_0 : i32, i32, i32
  }
}

</mosaic_0001>

<bundles_post_ra>
// kernel: vision_embeddings.1
= control target key start
LH: loop header
LB: loop body
LE: loop exit
PB: predicated region body
PF: predicated region fallthrough
CT: control target
= control target key end

     0   :  { %8 = vsyncpa [#allocation3], 0  ;;  %s691_s0 = inlined_call_operand.vmem [shape: bf16[64,48], index: 0, kind: input, shape index: {}]   ;;  %s692_s1 = inlined_call_operand.vmem [shape: f32[64,64], index: 1, kind: input, shape index: {}]   ;;  %s693_s2 = inlined_call_operand.vmem [shape: bf16[2,48,64], index: 2, kind: input, shape index: {}]   ;;  %s694_s3 = inlined_call_operand.hbm [shape: f32[2,64,64], index: 3, kind: output, shape index: {}]  }
   0x1   :  { %10 = vsyncpa [#allocation3 + $0x1], 0  ;;  %s547_s12 = smov 0   ;;  %s549_s13 = smov 0  }
   0x2   :  { %s551_s14 = smov 0   ;;  %s553_s15 = smov 0  }
   0x3 LB: > { %s568_s16 = sadd.s32 4294967295, %s523_s15   ;;  %s359_s17 = sadd.s32 4294967294, %s523_s15   ;;  %s523_s15 = sphi %s553_s15, %s700_s15   ;;  %s519_s14 = sphi %s551_s14, %s699_s14   ;;  %s515_s13 = sphi %s549_s13, %s698_s13   ;;  %s511_s12 = sphi %s547_s12, %s697_s12  }
   0x4   : > { %s572_s18 = sadd.s32 1, %s523_s15   ;;  %s91_s19 = sadd.s32 1, %s519_s14 }
   0x5   : > { %s88_s20 = ssub.s32 %s523_s15, %s572_s18  ;;  %p101_p0 = scmp.ne.s32.totalorder %s519_s14, %s515_s13 }
   0x6   : > { %p89_p1 = scmp.eq.s32.totalorder %s88_s20, 0  ;;  %p102_p2 = scmp.eq.s32.totalorder %s568_s16, 1 }
   0x7   : > { %p107_p3 = scmp.ne.s32.totalorder %s515_s13, %s511_s12  ;;  %p108_p4 = scmp.eq.s32.totalorder %s359_s17, 1 }
   0x8   : > { %s583_s21 = scalar_select %p89_p1, %s519_s14, %s91_s19  }
   0x9   : > { %p585_p5 = por %p102_p2, %p101_p0  ;;  %p589_p6 = por %p108_p4, %p107_p3 }
   0xa   : > { %p362_p7 = scmp.ge.s32.totalorder %s523_s15, 1  ;;  %p140_p8 = scmp.lt.s32.totalorder %s523_s15, 3 }
   0xc   : > { %p141_p9 = pnand %p362_p7, %p140_p8 }
   0xd   : > { %p164_p10 = scmp.lt.s32.totalorder (!%p141_p9), %s568_s16, 1  ;;  %s161_s10 = sand.u32 (!%p141_p9), 1, %s515_s13  }
   0xe   : > { %144 = sbr.rel (%p141_p9) target bundleno = 184 (0xb8), region = 32  ;;  %s363_s11 = sshll.u32 (!%p141_p9), %s161_s10, 6 }
   0xf   : > { %s409_s7 = sshll.u32 (!%p141_p9), %s568_s16, 6  ;;  %s282_s27 = scalar_lea.sflag (!%p141_p9), [#allocation3], %s161_s10 }
  0x10   : > { %s481_s5 = scalar_lea.hbm (!%p141_p9), %s694_s3, 128 }
  0x13   : > { %s165_s24 = scalar_select %p164_p10, %s568_s16, 1  ;;  %v402_v3 = vld [vmem:[%s691_s0] sm:$0xff]  ;;  %v403_v4 = vld [vmem:[%s691_s0 + $0x8] sm:$0xff]  ;;  %vm230_vm0 = vcmask 392192   ;;  %v404_v5 = vld [vmem:[%s691_s0 + $0x10] sm:$0xff]  ;;  %vm272_vm1 = vcmask 523264  }
  0x14   : > { %v405_v6 = vld [vmem:[%s691_s0 + $0x18] sm:$0xff]  ;;  %v178_v7 = vld [vmem:[%s692_s1] sm:$0xff]  ;;  %v180_v8 = vld [vmem:[%s692_s1 + $0x10] sm:$0xff] }
  0x15   : > { %s419_s25 = smul.u32 24, %s165_s24  ;;  %v182_v13 = vld [vmem:[%s692_s1 + $0x20] sm:$0xff]  ;;  %v184_v14 = vld [vmem:[%s692_s1 + $0x30] sm:$0xff]  ;;  %v179_v15 = vld [vmem:[%s692_s1 + $0x8] sm:$0xff] }
  0x16   : > { %v181_v16 = vld [vmem:[%s692_s1 + $0x18] sm:$0xff]  ;;  %v183_v25 = vld [vmem:[%s692_s1 + $0x28] sm:$0xff] }
  0x17   : > { %s168_s28 = scalar_lea.vmem %s693_s2, %s419_s25  ;;  %s621_s25 = scalar_lea.vmem [#allocation2], %s363_s11  ;;  %v185_v26 = vld [vmem:[%s692_s1 + $0x38] sm:$0xff] }
  0x18   : > { %v408_v0 = vld [vmem:[%s168_s28 + $0x10] sm:$0xff]  ;;  %v407_v1 = vld [vmem:[%s168_s28 + $0x8] sm:$0xff]  ;;  %v406_v2 = vld [vmem:[%s168_s28] sm:$0xff]  ;;  %s293_s11 = scalar_lea.hbm %s694_s3, %s409_s7  ;;  %s294_s24 = sshll.u32 %s621_s25, 4  ;;  %s295_s24 = int_to_ptr.vmem [resolvable:$true] %s294_s24 }
  0x19   : > { %248 = vmatpush.bf16.msra.mxu0 %v408_v0  ;;  %410 = vmatpush.bf16.msra.mxu1 %v408_v0  ;;  %s296_s26 = sshll.u32 %s293_s11, 4  ;;  %s297_s26 = int_to_ptr.hbm [resolvable:$true] %s296_s26 }
  0x1a   : > { %411 = vmatpush.bf16.msra.mxu2 %v408_v0  ;;  %412 = vmatpush.bf16.msra.mxu3 %v408_v0  ;;  %s475_s28 = sshra.s32 %s297_s26, 4  ;;  %s476_s28 = int_to_ptr.hbm [resolvable:$true] %s475_s28 }
  0x1b   : > { %s477_s29 = scalar_lea.hbm %s476_s28, 64  ;;  %p482_p0 = scmp.lt.s32.totalorder %s476_s28, %s694_s3 }
  0x1c   : > { %p478_p11 = scmp.ne.s32.totalorder %s476_s28, %s477_s29  ;;  %p483_p1 = scmp.lt.s32.totalorder %s481_s5, %s477_s29 }
  0x1d   : > { %249 = vmatpush.bf16.msra.mxu0 %v407_v1  ;;  %413 = vmatpush.bf16.msra.mxu1 %v407_v1 }
  0x1e   : > { %414 = vmatpush.bf16.msra.mxu2 %v407_v1  ;;  %415 = vmatpush.bf16.msra.mxu3 %v407_v1  ;;  %p479_p12 = pnand %p478_p11, %p585_p5  ;;  %p484_p2 = por %p483_p1, %p482_p0 }
  0x20   : > { %p480_p13 = pneg %p479_p12 }
  0x21   : > { %250 = vmatpush.bf16.msra.mxu0 %v406_v2  ;;  %416 = vmatpush.bf16.msra.mxu1 %v406_v2 }
  0x22   : > { %417 = vmatpush.bf16.msra.mxu2 %v406_v2  ;;  %418 = vmatpush.bf16.msra.mxu3 %v406_v2  ;;  %p485_p3 = pnand %p484_p2, %p480_p13 }
  0x24   : > { %393 = vmatmul.msk.bf16.vlgmr.msra.gmra.mxu0 %vm230_vm0, %v402_v3  ;;  %394 = vmatmul.msk.bf16.vlgmr.msra.gmra.mxu1 %vm230_vm0, %v403_v4 }
  0x25   : > { %395 = vmatmul.msk.bf16.vlgmr.msra.gmra.mxu2 %vm230_vm0, %v404_v5  ;;  %396 = vmatmul.msk.bf16.vlgmr.msra.gmra.mxu3 %vm230_vm0, %v405_v6 }
  0xa1   : > { %v252_v9 = vpop.f32.mrf.mxu0  ;;  %v257_v10 = vpop.f32.mrf.mxu1 }
  0xa2   : > { %v253_v11 = vadd.f32 %v252_v9, %v178_v7  ;;  %v258_v12 = vadd.f32 %v257_v10, %v180_v8 }
  0xa4   : > { %273 = vst.msk [vmem:[%s621_s25] sm:$0xff] %vm272_vm1, %v253_v11 }
  0xa5   : > { %275 = vst.msk [vmem:[%s621_s25 + $0x10] sm:$0xff] %vm272_vm1, %v258_v12 }
  0xa8   : > { %v262_v17 = vpop.f32.mrf.mxu2  ;;  %v267_v18 = vpop.f32.mrf.mxu3 }
  0xa9   : > { %v263_v19 = vadd.f32 %v262_v17, %v182_v13  ;;  %v268_v20 = vadd.f32 %v267_v18, %v184_v14  ;;  %v254_v21 = vpop.f32.mrf.mxu0  ;;  %v259_v22 = vpop.f32.mrf.mxu1 }
  0xaa   : > { %v255_v23 = vadd.f32 %v254_v21, %v179_v15  ;;  %v260_v24 = vadd.f32 %v259_v22, %v181_v16 }
  0xab   : > { %277 = vst.msk [vmem:[%s621_s25 + $0x20] sm:$0xff] %vm272_vm1, %v263_v19 }
  0xac   : > { %279 = vst.msk [vmem:[%s621_s25 + $0x30] sm:$0xff] %vm272_vm1, %v268_v20 }
  0xad   : > { %274 = vst.msk [vmem:[%s621_s25 + $0x8] sm:$0xff] %vm272_vm1, %v255_v23 }
  0xae   : > { %276 = vst.msk [vmem:[%s621_s25 + $0x18] sm:$0xff] %vm272_vm1, %v260_v24 }
  0xb0   : > { %v264_v27 = vpop.f32.mrf.mxu2  ;;  %v269_v28 = vpop.f32.mrf.mxu3 }
  0xb1   : > { %v265_v29 = vadd.f32 %v264_v27, %v183_v25  ;;  %v270_v30 = vadd.f32 %v269_v28, %v185_v26 }
  0xb3   : > { %278 = vst.msk [vmem:[%s621_s25 + $0x28] sm:$0xff] %vm272_vm1, %v265_v29 }
  0xb4   : > { %280 = vst.msk [vmem:[%s621_s25 + $0x38] sm:$0xff] %vm272_vm1, %v270_v30 }
  0xb5   : > { %488 = shalt.err (!%p485_p3)
}
  0xb6   : > { %s525_s10 = smov 128   ;;  %s526_s25 = smov 8  }
  0xb7   : > { %420 = dma.vmem_to_hbm [thread:$0]  (%p585_p5), %s295_s24, 1024, %s297_s26, %s282_s27, %s525_s10, %s525_s10, %s526_s25  }
  0xb8 PF: > { %p426_p4 = scmp.ge.s32.totalorder %s523_s15, 2  ;;  %s311_s8 = sand.u32 1, %s511_s12  }
  0xb9   : > { %s312_s9 = scalar_lea.sflag [#allocation3], %s311_s8 }
  0xba   : > { %p423_p7 = pnand %p426_p4, %p589_p6 }
  0xbc   : > { %p424_p8 = pneg %p423_p7 }
  0xbe   : > { %506 = dma.done.wait (%p424_p8), %s312_s9, 1024  }
  0xbf   : > { %508 = vsyncadd (%p424_p8), %s312_s9, 4294966272  ;;  %p13_p9 = scmp.ge.s32.totalorder %s572_s18, 4   ;;  %s697_s12 = smov %s515_s13 }
  0xc0   : > { %s698_s13 = smov %s519_s14  ;;  %s699_s14 = smov %s583_s21 }
  0xc1   : > { %s700_s15 = smov %s572_s18  ;;  %15 = sbr.rel (!%p13_p9) target bundleno = 3 (0x3), region = 67 }
  0xc6   :  { %318 = vsyncpa [#allocation3], 1 }
  0xc7   :  { %320 = vsyncpa [#allocation3 + $0x1], 1 }

</bundles_post_ra>
